<compile_context>
chip_gen: v6e
topology: v6e:2x2x1
jax: 0.10.0
libtpu: 0.0.40
codegen_flags: <defaults>
</compile_context>

<pallas_src>
import functools

import jax
import jax.numpy as jnp
from jax.experimental import pallas as pl
from jax.experimental.pallas import tpu as pltpu

EPS = 1e-5          # BatchNorm2d default eps


# ---------------------------------------------------------------------------
# Fused Bottleneck kernel
# ---------------------------------------------------------------------------
def _bottleneck_kernel(x_ref, w1_ref, b1_ref, w2_ref, b2_ref, o_ref, *,
                       H, W, C1, Cm, C2, add, bt):
    HW = H * W
    f32, bf16 = jnp.float32, jnp.bfloat16

    # Per-lane pixel coordinates of the flattened spatial axis.  Row tests use
    # the flat index directly; column tests use p mod W (bit-and when W is a
    # power of two) -> no integer division in the kernel.
    p = jax.lax.broadcasted_iota(jnp.int32, (1, HW), 1)
    if W & (W - 1) == 0:
        pj = jnp.bitwise_and(p, W - 1)
    else:
        pj = p % W

    # Static tap table: lane-roll amount + boundary mask for each 3x3 offset.
    taps = []
    for t in range(9):
        dy, dx = divmod(t, 3)
        dy -= 1
        dx -= 1
        shift = (-(dy * W + dx)) % HW          # jnp.roll-style positive shift
        conds = []
        if dy < 0:
            conds.append(p >= (-dy) * W)
        if dy > 0:
            conds.append(p < (H - dy) * W)
        if dx < 0:
            conds.append(pj >= -dx)
        if dx > 0:
            conds.append(pj < W - dx)
        mask = None
        for c in conds:
            mask = c if mask is None else jnp.logical_and(mask, c)
        taps.append((shift, mask))

    def im2col(a):
        """(C, HW) f32 -> fused 9-tap slab (9*C, HW) bf16 (single cast)."""
        pieces = []
        for shift, mask in taps:
            r = pltpu.roll(a, shift, axis=1) if shift else a
            if mask is not None:
                r = jnp.where(mask, r, 0)
            pieces.append(r)
        return jnp.concatenate(pieces, axis=0).astype(bf16)

    for ib in range(bt):                       # unrolled; bt is small
        x = x_ref[ib]                          # (C1, HW) f32

        # cv1: one MXU contraction over (tap, Cin), BN folded, SiLU in f32
        a1 = jnp.dot(w1_ref[...], im2col(x),
                     preferred_element_type=f32) + b1_ref[...]
        h1 = a1 * jax.nn.sigmoid(a1)           # (Cm, HW) f32

        # cv2: same, feeding the f32 intermediate straight back in
        a2 = jnp.dot(w2_ref[...], im2col(h1),
                     preferred_element_type=f32) + b2_ref[...]
        h2 = a2 * jax.nn.sigmoid(a2)           # (C2, HW) f32

        o_ref[ib] = (h2 + x) if add else h2    # residual in f32, lane-dense


def _images_per_step(B):
    """Amortise per-grid-step overhead (v5e/v6e single TC) while keeping >= 2
    grid steps so both v7x TensorCores stay busy."""
    if B <= 2:
        return 1
    bt = B // 2
    while B % bt:
        bt -= 1
    return bt


def bottleneck_forward(x, params):
    """x: (B, c1, H, W) NCHW float32 -> (B, c2, H, W) float32."""
    B, C1, H, W = x.shape
    w1f, b1f = params["cv1"]          # (c_, c1, 3, 3), (c_,)   BN folded
    w2f, b2f = params["cv2"]          # (c2, c_, 3, 3), (c2,)   BN folded
    Cm, C2 = w1f.shape[0], w2f.shape[0]
    add = params["add"]
    HW = H * W
    assert HW % 128 == 0, "flattened spatial axis must be lane-dense"
    assert C1 % 8 == 0 and Cm % 8 == 0 and C2 % 8 == 0
    if add:
        assert C1 == C2

    # (Cout, Cin, ky, kx) -> (Cout, 9*Cin) with taps major; bf16 for the MXU.
    def fuse_taps(w):
        cout, cin = w.shape[0], w.shape[1]
        return jnp.transpose(w, (0, 2, 3, 1)).reshape(cout, 9 * cin).astype(jnp.bfloat16)

    w1_r = fuse_taps(w1f)                            # (Cm, 9*C1)
    w2_r = fuse_taps(w2f)                            # (C2, 9*Cm)
    b1_r = b1f.reshape(Cm, 1).astype(jnp.float32)
    b2_r = b2f.reshape(C2, 1).astype(jnp.float32)

    # Free reshape to (C, HW) layout; minor HBM dim = HW >= 256 elements.
    # Single f32 input doubles as conv operand and residual source.
    x_in = x.reshape(B, C1, HW).astype(jnp.float32)

    bt = _images_per_step(B)
    grid = (B // bt,)

    kern = functools.partial(_bottleneck_kernel, H=H, W=W, C1=C1, Cm=Cm,
                             C2=C2, add=add, bt=bt)

    flops = 2 * B * HW * 9 * (C1 * Cm + Cm * C2)
    transcendentals = B * HW * (Cm + C2)
    bytes_accessed = (B * C1 * HW * 4 + B * C2 * HW * 4
                      + 2 * (int(w1_r.size) + int(w2_r.size)) + 4 * (Cm + C2))

    out = pl.pallas_call(
        kern,
        out_shape=jax.ShapeDtypeStruct((B, C2, HW), jnp.float32),
        grid=grid,
        in_specs=[
            pl.BlockSpec((bt, C1, HW), lambda s: (s, 0, 0)),
            pl.BlockSpec((Cm, 9 * C1), lambda s: (0, 0)),   # resident weights
            pl.BlockSpec((Cm, 1), lambda s: (0, 0)),
            pl.BlockSpec((C2, 9 * Cm), lambda s: (0, 0)),
            pl.BlockSpec((C2, 1), lambda s: (0, 0)),
        ],
        out_specs=pl.BlockSpec((bt, C2, HW), lambda s: (s, 0, 0)),
        compiler_params=pltpu.CompilerParams(
            dimension_semantics=("parallel",)),
        cost_estimate=pl.CostEstimate(flops=flops,
                                      transcendentals=transcendentals,
                                      bytes_accessed=bytes_accessed),
    )(x_in, w1_r, b1_r, w2_r, b2_r)
    return out.reshape(B, C2, H, W)


# ---------------------------------------------------------------------------
# Parameters (deterministic synthetic Conv2d + eval-mode BatchNorm, folded)
# ---------------------------------------------------------------------------
def fold_bn(w, gamma, beta, mean, var):
    scale = gamma / jnp.sqrt(var + EPS)
    return w * scale[:, None, None, None], beta - mean * scale


def make_conv_bn(key, cout, cin, k):
    k1, k2, k3, k4, k5 = jax.random.split(key, 5)
    w = 0.1 * jax.random.normal(k1, (cout, cin, k, k), jnp.float32)
    gamma = 1.0 + 0.1 * jax.random.normal(k2, (cout,), jnp.float32)
    beta = 0.1 * jax.random.normal(k3, (cout,), jnp.float32)
    mean = 0.1 * jax.random.normal(k4, (cout,), jnp.float32)
    var = jax.random.uniform(k5, (cout,), jnp.float32, 0.5, 1.5)
    return fold_bn(w, gamma, beta, mean, var)


def make_bottleneck_params(key, c1, c2, shortcut=True, e=0.5):
    c_ = int(c2 * e)
    k1, k2 = jax.random.split(key)
    return {
        "add": bool(shortcut and c1 == c2),
        "cv1": make_conv_bn(k1, c_, c1, 3),
        "cv2": make_conv_bn(k2, c2, c_, 3),
    }


# ---------------------------------------------------------------------------
# Pure-JAX reference (same bf16 operand rounding as the kernel)
# ---------------------------------------------------------------------------
def _silu(v):
    return v * jax.nn.sigmoid(v)


def _conv3x3_ref(x, w, b):
    y = jax.lax.conv_general_dilated(
        x, w, window_strides=(1, 1), padding=((1, 1), (1, 1)),
        dimension_numbers=("NCHW", "OIHW", "NCHW"),
        precision=jax.lax.Precision.HIGHEST)
    return y + b.reshape(1, -1, 1, 1)


def bottleneck_reference(x, params):
    bf = lambda a: a.astype(jnp.bfloat16).astype(jnp.float32)
    w1, b1 = params["cv1"]
    w2, b2 = params["cv2"]
    h1 = _silu(_conv3x3_ref(bf(x), bf(w1), b1))
    h2 = _silu(_conv3x3_ref(bf(h1), bf(w2), b2))
    return x + h2 if params["add"] else h2


if __name__ == "__main__":
    key = jax.random.PRNGKey(0)
    kx, kp = jax.random.split(key)

    # Bottleneck(c1=16, c2=16, shortcut=True, e=0.5) -> hidden c_ = 8, add=True
    B, C1, C2, H, W = 2, 16, 16, 16, 16
    x = jax.random.normal(kx, (B, C1, H, W), jnp.float32)
    params = make_bottleneck_params(kp, C1, C2, shortcut=True, e=0.5)

    fwd = jax.jit(lambda xx: bottleneck_forward(xx, params))
    out = jax.block_until_ready(fwd(x))

    ref = bottleneck_reference(x, params)
    assert out.shape == (B, C2, H, W), out.shape
    assert bool(jnp.all(jnp.isfinite(out)))
    err = float(jnp.max(jnp.abs(out - ref)))
    assert err < 1e-2, f"max abs err vs reference = {err}"
    print("KERNEL_OK")
</pallas_src>

<mosaic_0001>
module attributes {stable_mosaic.version = 11 : i64} {
  func.func @_bottleneck_kernel(%arg0: i32, %arg1: memref<1x16x256xf32, #tpu.memory_space<vmem>>, %arg2: memref<8x144xbf16, #tpu.memory_space<vmem>>, %arg3: memref<8x1xf32, #tpu.memory_space<vmem>>, %arg4: memref<16x72xbf16, #tpu.memory_space<vmem>>, %arg5: memref<16x1xf32, #tpu.memory_space<vmem>>, %arg6: memref<1x16x256xf32, #tpu.memory_space<vmem>>) attributes {dimension_semantics = [#tpu.dimension_semantics<parallel>], iteration_bounds = array<i64: 2>, scalar_prefetch = 0 : i64, scratch_operands = 0 : i64, tpu.core_type = #tpu.core_type<tc>, window_params = [{transform_indices = @transform_0, window_bounds = array<i64: 1, 16, 256>}, {pipeline_mode = #tpu.pipeline_mode<synchronous>, transform_indices = @transform_1, window_bounds = array<i64: 8, 144>}, {pipeline_mode = #tpu.pipeline_mode<synchronous>, transform_indices = @transform_2, window_bounds = array<i64: 8, 1>}, {pipeline_mode = #tpu.pipeline_mode<synchronous>, transform_indices = @transform_3, window_bounds = array<i64: 16, 72>}, {pipeline_mode = #tpu.pipeline_mode<synchronous>, transform_indices = @transform_4, window_bounds = array<i64: 16, 1>}, {transform_indices = @transform_5, window_bounds = array<i64: 1, 16, 256>}]} {
    %0 = tpu.iota {dimensions = array<i32: 1>} : vector<1x256xi32>
    %c15_i32 = arith.constant 15 : i32
    %1 = vector.broadcast %c15_i32 : i32 to vector<1x256xi32>
    %2 = arith.andi %0, %1 : vector<1x256xi32>
    %c16_i32 = arith.constant 16 : i32
    %3 = vector.broadcast %c16_i32 : i32 to vector<1x256xi32>
    %4 = arith.cmpi sge, %0, %3 : vector<1x256xi32>
    %c1_i32 = arith.constant 1 : i32
    %5 = vector.broadcast %c1_i32 : i32 to vector<1x256xi32>
    %6 = arith.cmpi sge, %2, %5 : vector<1x256xi32>
    %7 = arith.andi %4, %6 : vector<1x256xi1>
    %c16_i32_0 = arith.constant 16 : i32
    %8 = vector.broadcast %c16_i32_0 : i32 to vector<1x256xi32>
    %9 = arith.cmpi sge, %0, %8 : vector<1x256xi32>
    %c16_i32_1 = arith.constant 16 : i32
    %10 = vector.broadcast %c16_i32_1 : i32 to vector<1x256xi32>
    %11 = arith.cmpi sge, %0, %10 : vector<1x256xi32>
    %c15_i32_2 = arith.constant 15 : i32
    %12 = vector.broadcast %c15_i32_2 : i32 to vector<1x256xi32>
    %13 = arith.cmpi slt, %2, %12 : vector<1x256xi32>
    %14 = arith.andi %11, %13 : vector<1x256xi1>
    %c1_i32_3 = arith.constant 1 : i32
    %15 = vector.broadcast %c1_i32_3 : i32 to vector<1x256xi32>
    %16 = arith.cmpi sge, %2, %15 : vector<1x256xi32>
    %c15_i32_4 = arith.constant 15 : i32
    %17 = vector.broadcast %c15_i32_4 : i32 to vector<1x256xi32>
    %18 = arith.cmpi slt, %2, %17 : vector<1x256xi32>
    %c240_i32 = arith.constant 240 : i32
    %19 = vector.broadcast %c240_i32 : i32 to vector<1x256xi32>
    %20 = arith.cmpi slt, %0, %19 : vector<1x256xi32>
    %c1_i32_5 = arith.constant 1 : i32
    %21 = vector.broadcast %c1_i32_5 : i32 to vector<1x256xi32>
    %22 = arith.cmpi sge, %2, %21 : vector<1x256xi32>
    %23 = arith.andi %20, %22 : vector<1x256xi1>
    %c240_i32_6 = arith.constant 240 : i32
    %24 = vector.broadcast %c240_i32_6 : i32 to vector<1x256xi32>
    %25 = arith.cmpi slt, %0, %24 : vector<1x256xi32>
    %c240_i32_7 = arith.constant 240 : i32
    %26 = vector.broadcast %c240_i32_7 : i32 to vector<1x256xi32>
    %27 = arith.cmpi slt, %0, %26 : vector<1x256xi32>
    %c15_i32_8 = arith.constant 15 : i32
    %28 = vector.broadcast %c15_i32_8 : i32 to vector<1x256xi32>
    %29 = arith.cmpi slt, %2, %28 : vector<1x256xi32>
    %30 = arith.andi %27, %29 : vector<1x256xi1>
    %c0 = arith.constant 0 : index
    %c0_9 = arith.constant 0 : index
    %c0_10 = arith.constant 0 : index
    %31 = vector.load %arg1[%c0, %c0_9, %c0_10] : memref<1x16x256xf32, #tpu.memory_space<vmem>>, vector<1x16x256xf32>
    %32 = vector.shape_cast %31 : vector<1x16x256xf32> to vector<16x256xf32>
    %c0_11 = arith.constant 0 : index
    %c0_12 = arith.constant 0 : index
    %33 = vector.load %arg2[%c0_11, %c0_12] : memref<8x144xbf16, #tpu.memory_space<vmem>>, vector<8x144xbf16>
    %c17_i32 = arith.constant 17 : i32
    %34 = tpu.dynamic_rotate %32 by %c17_i32 dim 1 : vector<16x256xf32>, i32 -> vector<16x256xf32>
    %c0_i32 = arith.constant 0 : i32
    %35 = arith.sitofp %c0_i32 : i32 to f32
    %36 = vector.shape_cast %7 : vector<1x256xi1> to vector<1x256xi1>
    %37 = vector.broadcast %36 : vector<1x256xi1> to vector<16x256xi1>
    %38 = vector.broadcast %35 : f32 to vector<16x256xf32>
    %39 = arith.select %37, %34, %38 : vector<16x256xi1>, vector<16x256xf32>
    %c16_i32_13 = arith.constant 16 : i32
    %40 = tpu.dynamic_rotate %32 by %c16_i32_13 dim 1 : vector<16x256xf32>, i32 -> vector<16x256xf32>
    %c0_i32_14 = arith.constant 0 : i32
    %41 = arith.sitofp %c0_i32_14 : i32 to f32
    %42 = vector.shape_cast %9 : vector<1x256xi1> to vector<1x256xi1>
    %43 = vector.broadcast %42 : vector<1x256xi1> to vector<16x256xi1>
    %44 = vector.broadcast %41 : f32 to vector<16x256xf32>
    %45 = arith.select %43, %40, %44 : vector<16x256xi1>, vector<16x256xf32>
    %c15_i32_15 = arith.constant 15 : i32
    %46 = tpu.dynamic_rotate %32 by %c15_i32_15 dim 1 : vector<16x256xf32>, i32 -> vector<16x256xf32>
    %c0_i32_16 = arith.constant 0 : i32
    %47 = arith.sitofp %c0_i32_16 : i32 to f32
    %48 = vector.shape_cast %14 : vector<1x256xi1> to vector<1x256xi1>
    %49 = vector.broadcast %48 : vector<1x256xi1> to vector<16x256xi1>
    %50 = vector.broadcast %47 : f32 to vector<16x256xf32>
    %51 = arith.select %49, %46, %50 : vector<16x256xi1>, vector<16x256xf32>
    %c1_i32_17 = arith.constant 1 : i32
    %52 = tpu.dynamic_rotate %32 by %c1_i32_17 dim 1 : vector<16x256xf32>, i32 -> vector<16x256xf32>
    %c0_i32_18 = arith.constant 0 : i32
    %53 = arith.sitofp %c0_i32_18 : i32 to f32
    %54 = vector.shape_cast %16 : vector<1x256xi1> to vector<1x256xi1>
    %55 = vector.broadcast %54 : vector<1x256xi1> to vector<16x256xi1>
    %56 = vector.broadcast %53 : f32 to vector<16x256xf32>
    %57 = arith.select %55, %52, %56 : vector<16x256xi1>, vector<16x256xf32>
    %c255_i32 = arith.constant 255 : i32
    %58 = tpu.dynamic_rotate %32 by %c255_i32 dim 1 : vector<16x256xf32>, i32 -> vector<16x256xf32>
    %c0_i32_19 = arith.constant 0 : i32
    %59 = arith.sitofp %c0_i32_19 : i32 to f32
    %60 = vector.shape_cast %18 : vector<1x256xi1> to vector<1x256xi1>
    %61 = vector.broadcast %60 : vector<1x256xi1> to vector<16x256xi1>
    %62 = vector.broadcast %59 : f32 to vector<16x256xf32>
    %63 = arith.select %61, %58, %62 : vector<16x256xi1>, vector<16x256xf32>
    %c241_i32 = arith.constant 241 : i32
    %64 = tpu.dynamic_rotate %32 by %c241_i32 dim 1 : vector<16x256xf32>, i32 -> vector<16x256xf32>
    %c0_i32_20 = arith.constant 0 : i32
    %65 = arith.sitofp %c0_i32_20 : i32 to f32
    %66 = vector.shape_cast %23 : vector<1x256xi1> to vector<1x256xi1>
    %67 = vector.broadcast %66 : vector<1x256xi1> to vector<16x256xi1>
    %68 = vector.broadcast %65 : f32 to vector<16x256xf32>
    %69 = arith.select %67, %64, %68 : vector<16x256xi1>, vector<16x256xf32>
    %c240_i32_21 = arith.constant 240 : i32
    %70 = tpu.dynamic_rotate %32 by %c240_i32_21 dim 1 : vector<16x256xf32>, i32 -> vector<16x256xf32>
    %c0_i32_22 = arith.constant 0 : i32
    %71 = arith.sitofp %c0_i32_22 : i32 to f32
    %72 = vector.shape_cast %25 : vector<1x256xi1> to vector<1x256xi1>
    %73 = vector.broadcast %72 : vector<1x256xi1> to vector<16x256xi1>
    %74 = vector.broadcast %71 : f32 to vector<16x256xf32>
    %75 = arith.select %73, %70, %74 : vector<16x256xi1>, vector<16x256xf32>
    %c239_i32 = arith.constant 239 : i32
    %76 = tpu.dynamic_rotate %32 by %c239_i32 dim 1 : vector<16x256xf32>, i32 -> vector<16x256xf32>
    %c0_i32_23 = arith.constant 0 : i32
    %77 = arith.sitofp %c0_i32_23 : i32 to f32
    %78 = vector.shape_cast %30 : vector<1x256xi1> to vector<1x256xi1>
    %79 = vector.broadcast %78 : vector<1x256xi1> to vector<16x256xi1>
    %80 = vector.broadcast %77 : f32 to vector<16x256xf32>
    %81 = arith.select %79, %76, %80 : vector<16x256xi1>, vector<16x256xf32>
    %82 = tpu.concatenate %39, %45, %51, %57, %32, %63, %69, %75, %81 in 0 : vector<16x256xf32>, vector<16x256xf32>, vector<16x256xf32>, vector<16x256xf32>, vector<16x256xf32>, vector<16x256xf32>, vector<16x256xf32>, vector<16x256xf32>, vector<16x256xf32> -> vector<144x256xf32>
    %83 = arith.truncf %82 : vector<144x256xf32> to vector<144x256xbf16>
    %cst = arith.constant dense<0.000000e+00> : vector<8x256xf32>
    %84 = tpu.matmul %33, %83, %cst {dimension_numbers = #tpu.dot_dimension_numbers<[1], [0], [0], [1], [0, 0, 1, 1], [], []>} : vector<8x144xbf16>, vector<144x256xbf16>, vector<8x256xf32> -> vector<8x256xf32>
    %c0_24 = arith.constant 0 : index
    %c0_25 = arith.constant 0 : index
    %85 = vector.load %arg3[%c0_24, %c0_25] : memref<8x1xf32, #tpu.memory_space<vmem>>, vector<8x1xf32>
    %86 = vector.broadcast %85 : vector<8x1xf32> to vector<8x256xf32>
    %87 = arith.addf %84, %86 : vector<8x256xf32>
    %88 = arith.negf %87 : vector<8x256xf32>
    %89 = math.exp %88 : vector<8x256xf32>
    %cst_26 = arith.constant 1.000000e+00 : f32
    %90 = vector.broadcast %cst_26 : f32 to vector<8x256xf32>
    %91 = arith.addf %90, %89 : vector<8x256xf32>
    %92 = arith.divf %90, %91 : vector<8x256xf32>
    %93 = arith.mulf %87, %92 : vector<8x256xf32>
    %c0_27 = arith.constant 0 : index
    %c0_28 = arith.constant 0 : index
    %94 = vector.load %arg4[%c0_27, %c0_28] : memref<16x72xbf16, #tpu.memory_space<vmem>>, vector<16x72xbf16>
    %c17_i32_29 = arith.constant 17 : i32
    %95 = tpu.dynamic_rotate %93 by %c17_i32_29 dim 1 : vector<8x256xf32>, i32 -> vector<8x256xf32>
    %c0_i32_30 = arith.constant 0 : i32
    %96 = arith.sitofp %c0_i32_30 : i32 to f32
    %97 = vector.shape_cast %7 : vector<1x256xi1> to vector<1x256xi1>
    %98 = vector.broadcast %97 : vector<1x256xi1> to vector<8x256xi1>
    %99 = vector.broadcast %96 : f32 to vector<8x256xf32>
    %100 = arith.select %98, %95, %99 : vector<8x256xi1>, vector<8x256xf32>
    %c16_i32_31 = arith.constant 16 : i32
    %101 = tpu.dynamic_rotate %93 by %c16_i32_31 dim 1 : vector<8x256xf32>, i32 -> vector<8x256xf32>
    %c0_i32_32 = arith.constant 0 : i32
    %102 = arith.sitofp %c0_i32_32 : i32 to f32
    %103 = vector.shape_cast %9 : vector<1x256xi1> to vector<1x256xi1>
    %104 = vector.broadcast %103 : vector<1x256xi1> to vector<8x256xi1>
    %105 = vector.broadcast %102 : f32 to vector<8x256xf32>
    %106 = arith.select %104, %101, %105 : vector<8x256xi1>, vector<8x256xf32>
    %c15_i32_33 = arith.constant 15 : i32
    %107 = tpu.dynamic_rotate %93 by %c15_i32_33 dim 1 : vector<8x256xf32>, i32 -> vector<8x256xf32>
    %c0_i32_34 = arith.constant 0 : i32
    %108 = arith.sitofp %c0_i32_34 : i32 to f32
    %109 = vector.shape_cast %14 : vector<1x256xi1> to vector<1x256xi1>
    %110 = vector.broadcast %109 : vector<1x256xi1> to vector<8x256xi1>
    %111 = vector.broadcast %108 : f32 to vector<8x256xf32>
    %112 = arith.select %110, %107, %111 : vector<8x256xi1>, vector<8x256xf32>
    %c1_i32_35 = arith.constant 1 : i32
    %113 = tpu.dynamic_rotate %93 by %c1_i32_35 dim 1 : vector<8x256xf32>, i32 -> vector<8x256xf32>
    %c0_i32_36 = arith.constant 0 : i32
    %114 = arith.sitofp %c0_i32_36 : i32 to f32
    %115 = vector.shape_cast %16 : vector<1x256xi1> to vector<1x256xi1>
    %116 = vector.broadcast %115 : vector<1x256xi1> to vector<8x256xi1>
    %117 = vector.broadcast %114 : f32 to vector<8x256xf32>
    %118 = arith.select %116, %113, %117 : vector<8x256xi1>, vector<8x256xf32>
    %c255_i32_37 = arith.constant 255 : i32
    %119 = tpu.dynamic_rotate %93 by %c255_i32_37 dim 1 : vector<8x256xf32>, i32 -> vector<8x256xf32>
    %c0_i32_38 = arith.constant 0 : i32
    %120 = arith.sitofp %c0_i32_38 : i32 to f32
    %121 = vector.shape_cast %18 : vector<1x256xi1> to vector<1x256xi1>
    %122 = vector.broadcast %121 : vector<1x256xi1> to vector<8x256xi1>
    %123 = vector.broadcast %120 : f32 to vector<8x256xf32>
    %124 = arith.select %122, %119, %123 : vector<8x256xi1>, vector<8x256xf32>
    %c241_i32_39 = arith.constant 241 : i32
    %125 = tpu.dynamic_rotate %93 by %c241_i32_39 dim 1 : vector<8x256xf32>, i32 -> vector<8x256xf32>
    %c0_i32_40 = arith.constant 0 : i32
    %126 = arith.sitofp %c0_i32_40 : i32 to f32
    %127 = vector.shape_cast %23 : vector<1x256xi1> to vector<1x256xi1>
    %128 = vector.broadcast %127 : vector<1x256xi1> to vector<8x256xi1>
    %129 = vector.broadcast %126 : f32 to vector<8x256xf32>
    %130 = arith.select %128, %125, %129 : vector<8x256xi1>, vector<8x256xf32>
    %c240_i32_41 = arith.constant 240 : i32
    %131 = tpu.dynamic_rotate %93 by %c240_i32_41 dim 1 : vector<8x256xf32>, i32 -> vector<8x256xf32>
    %c0_i32_42 = arith.constant 0 : i32
    %132 = arith.sitofp %c0_i32_42 : i32 to f32
    %133 = vector.shape_cast %25 : vector<1x256xi1> to vector<1x256xi1>
    %134 = vector.broadcast %133 : vector<1x256xi1> to vector<8x256xi1>
    %135 = vector.broadcast %132 : f32 to vector<8x256xf32>
    %136 = arith.select %134, %131, %135 : vector<8x256xi1>, vector<8x256xf32>
    %c239_i32_43 = arith.constant 239 : i32
    %137 = tpu.dynamic_rotate %93 by %c239_i32_43 dim 1 : vector<8x256xf32>, i32 -> vector<8x256xf32>
    %c0_i32_44 = arith.constant 0 : i32
    %138 = arith.sitofp %c0_i32_44 : i32 to f32
    %139 = vector.shape_cast %30 : vector<1x256xi1> to vector<1x256xi1>
    %140 = vector.broadcast %139 : vector<1x256xi1> to vector<8x256xi1>
    %141 = vector.broadcast %138 : f32 to vector<8x256xf32>
    %142 = arith.select %140, %137, %141 : vector<8x256xi1>, vector<8x256xf32>
    %143 = tpu.concatenate %100, %106, %112, %118, %93, %124, %130, %136, %142 in 0 : vector<8x256xf32>, vector<8x256xf32>, vector<8x256xf32>, vector<8x256xf32>, vector<8x256xf32>, vector<8x256xf32>, vector<8x256xf32>, vector<8x256xf32>, vector<8x256xf32> -> vector<72x256xf32>
    %144 = arith.truncf %143 : vector<72x256xf32> to vector<72x256xbf16>
    %cst_45 = arith.constant dense<0.000000e+00> : vector<16x256xf32>
    %145 = tpu.matmul %94, %144, %cst_45 {dimension_numbers = #tpu.dot_dimension_numbers<[1], [0], [0], [1], [0, 0, 1, 1], [], []>} : vector<16x72xbf16>, vector<72x256xbf16>, vector<16x256xf32> -> vector<16x256xf32>
    %c0_46 = arith.constant 0 : index
    %c0_47 = arith.constant 0 : index
    %146 = vector.load %arg5[%c0_46, %c0_47] : memref<16x1xf32, #tpu.memory_space<vmem>>, vector<16x1xf32>
    %147 = vector.broadcast %146 : vector<16x1xf32> to vector<16x256xf32>
    %148 = arith.addf %145, %147 : vector<16x256xf32>
    %149 = arith.negf %148 : vector<16x256xf32>
    %150 = math.exp %149 : vector<16x256xf32>
    %cst_48 = arith.constant 1.000000e+00 : f32
    %151 = vector.broadcast %cst_48 : f32 to vector<16x256xf32>
    %152 = arith.addf %151, %150 : vector<16x256xf32>
    %153 = arith.divf %151, %152 : vector<16x256xf32>
    %154 = arith.mulf %148, %153 : vector<16x256xf32>
    %155 = arith.addf %154, %32 : vector<16x256xf32>
    %c0_49 = arith.constant 0 : index
    %c0_50 = arith.constant 0 : index
    %c0_51 = arith.constant 0 : index
    %156 = vector.load %arg6[%c0_49, %c0_50, %c0_51] : memref<1x16x256xf32, #tpu.memory_space<vmem>>, vector<1x16x256xf32>
    %157 = vector.shape_cast %156 : vector<1x16x256xf32> to vector<16x256xf32>
    %158 = vector.shape_cast %155 : vector<16x256xf32> to vector<1x16x256xf32>
    tpu.vector_store %arg6[%c0_49, %c0_50, %c0_51], %158 {strides = array<i32>} : memref<1x16x256xf32, #tpu.memory_space<vmem>>, vector<1x16x256xf32>,
    return
  }
  func.func @transform_0(%arg0: i32) -> (i32, i32, i32) {
    %c0_i32 = arith.constant 0 : i32
    %c0_i32_0 = arith.constant 0 : i32
    %c0_i32_1 = arith.constant 0 : i32
    return %arg0, %c0_i32, %c0_i32_0 : i32, i32, i32
  }
  func.func @transform_1(%arg0: i32) -> (i32, i32) {
    %c0_i32 = arith.constant 0 : i32
    %c0_i32_0 = arith.constant 0 : i32
    %c0_i32_1 = arith.constant 0 : i32
    return %c0_i32, %c0_i32_0 : i32, i32
  }
  func.func @transform_2(%arg0: i32) -> (i32, i32) {
    %c0_i32 = arith.constant 0 : i32
    %c0_i32_0 = arith.constant 0 : i32
    %c0_i32_1 = arith.constant 0 : i32
    return %c0_i32, %c0_i32_0 : i32, i32
  }
  func.func @transform_3(%arg0: i32) -> (i32, i32) {
    %c0_i32 = arith.constant 0 : i32
    %c0_i32_0 = arith.constant 0 : i32
    %c0_i32_1 = arith.constant 0 : i32
    return %c0_i32, %c0_i32_0 : i32, i32
  }
  func.func @transform_4(%arg0: i32) -> (i32, i32) {
    %c0_i32 = arith.constant 0 : i32
    %c0_i32_0 = arith.constant 0 : i32
    %c0_i32_1 = arith.constant 0 : i32
    return %c0_i32, %c0_i32_0 : i32, i32
  }
  func.func @transform_5(%arg0: i32) -> (i32, i32, i32) {
    %c0_i32 = arith.constant 0 : i32
    %c0_i32_0 = arith.constant 0 : i32
    %c0_i32_1 = arith.constant 0 : i32
    return %arg0, %c0_i32, %c0_i32_0 : i32, i32, i32
  }
}

</mosaic_0001>

<bundles_post_ra>
// kernel: _lambda_.1
= control target key start
LH: loop header
LB: loop body
LE: loop exit
PB: predicated region body
PF: predicated region fallthrough
CT: control target
= control target key end

     0   :  { %s1053_s18 = smov 0   ;;  %s1409_s0 = inlined_call_operand.vmem [shape: f32[2,16,256], index: 0, kind: input, shape index: {}]   ;;  %s1410_s1 = inlined_call_operand.vmem [shape: bf16[8,144], index: 1, kind: input, shape index: {}]   ;;  %s1411_s2 = inlined_call_operand.vmem [shape: f32[8,1], index: 2, kind: input, shape index: {}]   ;;  %s1412_s3 = inlined_call_operand.vmem [shape: bf16[16,72], index: 3, kind: input, shape index: {}]   ;;  %s1413_s4 = inlined_call_operand.vmem [shape: f32[16,1], index: 4, kind: input, shape index: {}]   ;;  %s1414_s5 = inlined_call_operand.vmem [shape: f32[2,16,256], index: 5, kind: output, shape index: {}]  }
   0x1 LB: > { %s747_s19 = sadd.s32 4294967295, %s1011_s18   ;;  %p751_p0 = scmp.ge.s32.totalorder %s1011_s18, 1  ;;  %s1011_s18 = sphi %s1053_s18, %s15_s18  }
   0x2   : > { %p187_p1 = scmp.lt.s32.totalorder %s1011_s18, 3 }
   0x4   : > { %p188_p2 = pnand %p751_p0, %p187_p1 }
   0x5   : > { %p215_p3 = scmp.lt.s32.totalorder (!%p188_p2), %s747_s19, 1  ;;  %s1013_s24 = smov (!%p188_p2), 113  }
   0x6   : > { %191 = sbr.rel (%p188_p2) target bundleno = 790 (0x316), region = 40  ;;  %s1014_s25 = smov (!%p188_p2), 112  }
   0x7   : > { %s1015_s26 = smov (!%p188_p2), 127   ;;  %s1016_s27 = smov (!%p188_p2), 1  }
   0x8   : > { %s1017_s28 = smov (!%p188_p2), 15   ;;  %s1018_s29 = smov (!%p188_p2), 16  }
   0x9   : > { %s1019_s30 = smov (!%p188_p2), 17   ;;  %s1020_s6 = smov (!%p188_p2), 111  }
   0xb   : > { %s1449_s19 = smov (!%p215_p3, %s747_s19), 1  ;;  %v1100_v6 = vld [vmem:[%s1410_s1] sm:$0xff]  ;;  %vm450_vm0 = vcmask 130048   ;;  %v1021_v9 = vmov 0   ;;  %v226_v10 = vlaneseq }
   0xc   : > { %s836_s20 = sshll.u32 %s1449_s19, 5  ;;  %v757_v7 = vcombine.high %v1100_v6, %v1100_v6  ;;  %v438_v8 = vld [vmem:[%s1411_s2] sm:$0xff]  ;;  %936 = vset.pattern.permute.xlu0 %v1021_v9  ;;  %645 = vmatprep.mubr.bf16.mxu1 %v1021_v9 }
   0xd   : > { %s219_s23 = scalar_lea.vmem %s1409_s0, %s836_s20  ;;  %977 = vset.pattern.permute.xlu1 %v1021_v9  ;;  %v1107_v11 = vand.u32 127, %v226_v10  ;;  %v980_v21 = vld [vmem:[%s1412_s3] sm:$0xff]   ;;  %s224_s22 = scalar_lea.vmem %s1414_s5, %s836_s20 }
   0xe   : > { %v1069_v0 = vld [vmem:[%s219_s23] sm:$0xff]  ;;  %v1071_v1 = vld [vmem:[%s219_s23 + $0x10] sm:$0xff]  ;;  %v1073_v2 = vld [vmem:[%s219_s23 + $0x8] sm:$0xff]  ;;  %800 = vmatprep.mubr.msk.bf16.mxu0 %vm450_vm0, %v757_v7 }
   0xf   : > { %v866_v3 = vpack.i.bf16 %v1071_v1, %v1069_v0  ;;  %v1077_v4 = vld [vmem:[%s219_s23 + $0x18] sm:$0xff]  ;;  %v1110_v12 = vadd.s32 128, %v1107_v11  ;;  %v229_v18 = vand.u32 15, %v1107_v11  ;;  %vm1418_vm1 = vcmp.lt.s32.totalorder %v1107_v11, 113 }
  0x10   : > { %v871_v5 = vpack.i.bf16 %v1077_v4, %v1073_v2  ;;  %vm386_vm3 = vcmp.lt.s32.totalorder %v1107_v11, 112  ;;  %vm1416_vm5 = vcmp.lt.s32.totalorder %v1107_v11, 127  ;;  %vm1415_vm14 = vcmp.lt.s32.totalorder %v1107_v11, 1 }
  0x11   : > { %867 = vrot.lane.b32.xlu1 %v866_v3, %s1013_s24  ;;  %857 = vrot.lane.b32.xlu0 %v866_v3, %s1014_s25  ;;  %v230_v15 = vand.u32 15, %v1110_v12  ;;  %vm242_vm2 = vcmp.lt.s32.totalorder %v1110_v12, 240  ;;  %vm1134_vm7 = vcmp.ge.s32.totalorder %v229_v18, 1  ;;  %vm1164_vm11 = vcmp.lt.s32.totalorder %v229_v18, 15 }
  0x12   : > { %vm758_vm8 = vmpackc.low %vm242_vm2, %vm242_vm2  ;;  %vm1417_vm0 = vcmp.lt.s32.totalorder %v1107_v11, 15 }
  0x13   : > { %vm1117_vm4 = vcmp.ge.s32.totalorder %v230_v15, 1  ;;  %vm1156_vm10 = vcmp.lt.s32.totalorder %v230_v15, 15  ;;  %vm764_vm12 = vmpackc.low %vm1134_vm7, %vm1134_vm7  ;;  %v428_v15 = vpack.c.bf16 %v1071_v1, %v1069_v0 }
  0x14   : > { %vm1130_vm6 = vmand %vm242_vm2, %vm1117_vm4 }
  0x15   : > { %872 = vrot.lane.b32.xlu1 %v871_v5, %s1013_s24  ;;  %862 = vrot.lane.b32.xlu0 %v871_v5, %s1014_s25  ;;  %vm761_vm9 = vmpackc.low %vm1130_vm6, %vm1130_vm6 }
  0x16   : > { %vm767_vm13 = vmpackc.low %vm1156_vm10, %vm1156_vm10 }
  0x17   : > { %vm770_vm15 = vmpackc.low %vm1164_vm11, %vm1164_vm11 }
  0x19   : > { %882 = vrot.lane.b32.xlu1 %v871_v5, %s1015_s26  ;;  %877 = vrot.lane.b32.xlu0 %v866_v3, %s1015_s26 }
  0x1d   : > { %892 = vrot.lane.b32.xlu1 %v871_v5, %s1016_s27  ;;  %887 = vrot.lane.b32.xlu0 %v866_v3, %s1016_s27 }
  0x21   : > { %902 = vrot.lane.b32.xlu1 %v871_v5, %s1017_s28  ;;  %897 = vrot.lane.b32.xlu0 %v866_v3, %s1017_s28 }
  0x25   : > { %912 = vrot.lane.b32.xlu1 %v871_v5, %s1018_s29  ;;  %907 = vrot.lane.b32.xlu0 %v866_v3, %s1018_s29 }
  0x29   : > { %922 = vrot.lane.b32.xlu1 %v871_v5, %s1019_s30  ;;  %917 = vrot.lane.b32.xlu0 %v866_v3, %s1019_s30 }
  0x2d   : > { %932 = vrot.lane.b32.xlu1 %v871_v5, %s1020_s6  ;;  %927 = vrot.lane.b32.xlu0 %v866_v3, %s1020_s6  ;;  %v429_v3 = vpack.c.bf16 %v1077_v4, %v1073_v2 }
  0x31   : > { %441 = vperm.xlu0 %936, %v438_v8  }
  0x83   : > { %v868_v13 = vpop.permute.xlu1 %867  ;;  %v858_v14 = vpop.permute.xlu0 %857 }
  0x84   : > { %v870_v16 = vunpack.i.h.bf16 %v868_v13  ;;  %v869_v17 = vunpack.i.l.bf16 %v868_v13  ;;  %v860_v26 = vunpack.i.h.bf16 %v858_v14  ;;  %v859_v27 = vunpack.i.l.bf16 %v858_v14 }
  0x87   : > { %v873_v19 = vpop.permute.xlu1 %872  ;;  %v863_v20 = vpop.permute.xlu0 %862 }
  0x88   : > { %v875_v22 = vunpack.i.h.bf16 %v873_v19  ;;  %v874_v23 = vunpack.i.l.bf16 %v873_v19  ;;  %v865_v24 = vunpack.i.h.bf16 %v863_v20  ;;  %v864_v25 = vunpack.i.l.bf16 %v863_v20 }
  0x8a   : > { %v366_v28 = vsel %vm1418_vm1, %v869_v17, %v874_v23  ;;  %v367_v29 = vsel %vm1418_vm1, %v870_v16, %v875_v22  ;;  %v368_v32 = vsel %vm1418_vm1, %v874_v23, %v869_v17  ;;  %v369_v33 = vsel %vm1418_vm1, %v875_v22, %v870_v16 }
  0x8b   : > { %v389_v34 = vsel %vm386_vm3, %v864_v25, %v859_v27  ;;  %v390_v35 = vsel %vm386_vm3, %v865_v24, %v860_v26  ;;  %v883_v36 = vpop.permute.xlu1 %882  ;;  %v878_v37 = vpop.permute.xlu0 %877  ;;  %v387_v39 = vsel %vm386_vm3, %v859_v27, %v864_v25  ;;  %v388_v40 = vsel %vm386_vm3, %v860_v26, %v865_v24 }
  0x8c   : > { %v759_v38 = vpack.c.bf16 %v390_v35, %v389_v34  ;;  %v885_v41 = vunpack.i.h.bf16 %v883_v36  ;;  %v434_v42 = vpack.c.bf16 %v388_v40, %v387_v39  ;;  %v884_v43 = vunpack.i.l.bf16 %v883_v36 }
  0x8d   : > { %v880_v44 = vunpack.i.h.bf16 %v878_v37  ;;  %v879_v45 = vunpack.i.l.bf16 %v878_v37  ;;  %v762_v46 = vpack.c.bf16 %v369_v33, %v368_v32  ;;  %v765_v53 = vpack.c.bf16 %v367_v29, %v366_v28 }
  0x8e   : > { %760 = vmatprep.subr.msk.bf16.mxu0 %vm758_vm8, %v759_v38  ;;  %vm773_vm8 = vmpackc.low %vm1117_vm4, %vm1117_vm4 }
  0x8f   : > { %455 = vmatpush1.bf16.msra.mxu0 %v434_v42  ;;  %v348_v48 = vsel %vm1416_vm5, %v885_v41, %v880_v44  ;;  %v347_v49 = vsel %vm1416_vm5, %v884_v43, %v879_v45  ;;  %v893_v51 = vpop.permute.xlu1 %892  ;;  %v888_v52 = vpop.permute.xlu0 %887  ;;  %v346_v54 = vsel %vm1416_vm5, %v880_v44, %v885_v41  ;;  %v345_v55 = vsel %vm1416_vm5, %v879_v45, %v884_v43 }
  0x90   : > { %v768_v56 = vpack.c.bf16 %v348_v48, %v347_v49  ;;  %763 = vmatprep.subr.msk.bf16.mxu0 %vm761_vm9, %v762_v46  ;;  %v895_v57 = vunpack.i.h.bf16 %v893_v51  ;;  %v894_v58 = vunpack.i.l.bf16 %v893_v51  ;;  %v890_v59 = vunpack.i.h.bf16 %v888_v52 }
  0x91   : > { %v889_v60 = vunpack.i.l.bf16 %v888_v52  ;;  %v771_v61 = vpack.c.bf16 %v346_v54, %v345_v55  ;;  %vm1419_vm9 = vcmp.lt.s32.totalorder %v1107_v11, 16 }
  0x92   : > { %v325_v8 = vsel %vm1415_vm14, %v890_v59, %v895_v57  ;;  %v327_v14 = vsel %vm1415_vm14, %v895_v57, %v890_v59 }
  0x93   : > { %766 = vmatpush1.bf16.msk.msra.mxu0 %vm764_vm12, %v765_v53  ;;  %v903_v62 = vpop.permute.xlu1 %902  ;;  %v898_v63 = vpop.permute.xlu0 %897  ;;  %v324_v9 = vsel %vm1415_vm14, %v889_v60, %v894_v58  ;;  %v326_v18 = vsel %vm1415_vm14, %v894_v58, %v889_v60  ;;  %vm1420_vm14 = vcmp.ge.s32.totalorder %v1107_v11, 16 }
  0x94   : > { %769 = vmatprep.subr.msk.bf16.mxu0 %vm767_vm13, %v768_v56  ;;  %v905_v5 = vunpack.i.h.bf16 %v903_v62  ;;  %v904_v7 = vunpack.i.l.bf16 %v903_v62  ;;  %v900_v10 = vunpack.i.h.bf16 %v898_v63  ;;  %v899_v13 = vunpack.i.l.bf16 %v898_v63  ;;  %vm1232_vm5 = vmand %vm1420_vm14, %vm1164_vm11 }
  0x95   : > { %v774_v19 = vpack.c.bf16 %v325_v8, %v324_v9  ;;  %v777_v27 = vpack.c.bf16 %v327_v14, %v326_v18  ;;  %vm782_vm1 = vmpackc.low %vm1232_vm5, %vm1232_vm5 }
  0x96   : > { %v304_v20 = vsel %vm1417_vm0, %v900_v10, %v905_v5  ;;  %v303_v22 = vsel %vm1417_vm0, %v899_v13, %v904_v7  ;;  %v306_v28 = vsel %vm1417_vm0, %v905_v5, %v900_v10  ;;  %v305_v29 = vsel %vm1417_vm0, %v904_v7, %v899_v13 }
  0x97   : > { %772 = vmatpush1.bf16.msk.msra.mxu0 %vm770_vm15, %v771_v61  ;;  %v913_v16 = vpop.permute.xlu1 %912  ;;  %v908_v17 = vpop.permute.xlu0 %907  ;;  %v780_v34 = vpack.c.bf16 %v304_v20, %v303_v22  ;;  %vm260_vm0 = vcmp.lt.s32.totalorder %v1107_v11, 17  ;;  %v783_v42 = vpack.c.bf16 %v306_v28, %v305_v29  ;;  %v756_v10 = vcombine.low %v1100_v6, %v1100_v6 }
  0x98   : > { %460 = vmatprep.subr.bf16.mxu0 %v429_v3  ;;  %v915_v23 = vunpack.i.h.bf16 %v913_v16  ;;  %v914_v24 = vunpack.i.l.bf16 %v913_v16  ;;  %v910_v25 = vunpack.i.h.bf16 %v908_v17  ;;  %v909_v26 = vunpack.i.l.bf16 %v908_v17 }
  0x9a   : > { %v282_v40 = vsel %vm1419_vm9, %v909_v26, %v914_v24  ;;  %v283_v41 = vsel %vm1419_vm9, %v910_v25, %v915_v23  ;;  %v285_v43 = vsel %vm1419_vm9, %v915_v23, %v910_v25  ;;  %v284_v46 = vsel %vm1419_vm9, %v914_v24, %v909_v26  ;;  %vm1286_vm9 = vmand %vm242_vm2, %vm1156_vm10 }
  0x9b   : > { %461 = vmatpush1.bf16.msra.mxu0 %v428_v15  ;;  %v923_v32 = vpop.permute.xlu1 %922  ;;  %v918_v33 = vpop.permute.xlu0 %917  ;;  %v423_v51 = vpack.c.bf16 %v283_v41, %v282_v40  ;;  %v786_v56 = vpack.c.bf16 %v285_v43, %v284_v46 }
  0x9c   : > { %775 = vmatprep.subr.msk.bf16.mxu0 %vm773_vm8, %v774_v19  ;;  %v925_v35 = vunpack.i.h.bf16 %v923_v32  ;;  %v924_v36 = vunpack.i.l.bf16 %v923_v32  ;;  %v920_v37 = vunpack.i.h.bf16 %v918_v33  ;;  %v919_v39 = vunpack.i.l.bf16 %v918_v33  ;;  %v585_v33 = vld [vmem:[%s1413_s4] sm:$0xff] }
  0x9e   : > { %v262_v48 = vsel %vm260_vm0, %v920_v37, %v925_v35  ;;  %v261_v49 = vsel %vm260_vm0, %v919_v39, %v924_v36  ;;  %v264_v57 = vsel %vm260_vm0, %v925_v35, %v920_v37  ;;  %v263_v58 = vsel %vm260_vm0, %v924_v36, %v919_v39 }
  0x9f   : > { %778 = vmatpush1.bf16.msk.msra.mxu0 %vm764_vm12, %v777_v27  ;;  %v933_v44 = vpop.permute.xlu1 %932  ;;  %v928_v45 = vpop.permute.xlu0 %927  ;;  %vm407_vm12 = vcmp.lt.s32.totalorder %v1107_v11, 111  ;;  %v789_v59 = vpack.c.bf16 %v262_v48, %v261_v49  ;;  %v792_v3 = vpack.c.bf16 %v264_v57, %v263_v58 }
  0xa0   : > { %781 = vmatprep.subr.msk.bf16.mxu0 %vm767_vm13, %v780_v34  ;;  %v935_v52 = vunpack.i.h.bf16 %v933_v44  ;;  %v934_v53 = vunpack.i.l.bf16 %v933_v44  ;;  %v930_v54 = vunpack.i.h.bf16 %v928_v45  ;;  %v929_v55 = vunpack.i.l.bf16 %v928_v45  ;;  %vm785_vm13 = vmpackc.low %vm1420_vm14, %vm1420_vm14  ;;  %v586_v34 = vld [vmem:[%s1413_s4 + $0x8] sm:$0xff] }
  0xa2   : > { %v411_v60 = vsel %vm407_vm12, %v935_v52, %v930_v54  ;;  %v410_v61 = vsel %vm407_vm12, %v934_v53, %v929_v55  ;;  %v409_v5 = vsel %vm407_vm12, %v930_v54, %v935_v52  ;;  %v408_v7 = vsel %vm407_vm12, %v929_v55, %v934_v53 }
  0xa3   : > { %784 = vmatpush1.bf16.msk.msra.mxu0 %vm782_vm1, %v783_v42  ;;  %vm1278_vm1 = vmand %vm1420_vm14, %vm1134_vm7  ;;  %v795_v8 = vpack.c.bf16 %v411_v60, %v410_v61  ;;  %v798_v9 = vpack.c.bf16 %v409_v5, %v408_v7 }
  0xa4   : > { %466 = vmatprep.subr.bf16.mxu0 %v423_v51  ;;  %vm791_vm14 = vmpackc.low %vm1278_vm1, %vm1278_vm1 }
  0xa7   : > { %787 = vmatpush1.bf16.msk.msra.mxu0 %vm785_vm13, %v786_v56  ;;  %vm794_vm13 = vmpackc.low %vm1286_vm9, %vm1286_vm9 }
  0xa8   : > { %790 = vmatprep.subr.msk.bf16.mxu0 %vm773_vm8, %v789_v59  ;;  %vm805_vm8 = vmpackc.low %vm242_vm2, %vm1130_vm6  ;;  %vm1439_vm6 = vcmp.lt.s32.totalorder %v1107_v11, 127 }
  0xab   : > { %793 = vmatpush1.bf16.msk.msra.mxu0 %vm791_vm14, %v792_v3  ;;  %vm606_vm14 = vcmask 1043456  }
  0xac   : > { %796 = vmatprep.subr.msk.bf16.mxu0 %vm794_vm13, %v795_v8  ;;  %v442_v13 = vpop.permute.xlu0 %441 }
  0xaf   : > { %799 = vmatpush2.bf16.msk.msra.mxu0 %vm770_vm15, %v798_v9  ;;  %vm1437_vm15 = vcmp.lt.s32.totalorder %v1107_v11, 113 }
  0xb2   : > { %487 = vmatmul.mubr.bf16.vlgmr.msra.gmra.mxu0 %v756_v10 }
 0x172   : > { %v488_v14 = vpop.f32.mrf.mxu0 }
 0x173   : > { %v489_v15 = vadd.f32 %v488_v14, %v442_v13 }
 0x174   : > { %v490_v16 = vpop.f32.mrf.mxu0 }
 0x175   : > { %v801_v17 = vmul.f32 -1.442695, %v489_v15  ;;  %v491_v18 = vadd.f32 %v490_v16, %v442_v13 }
 0x176   : > { %v492_v19 = vpop.f32.mrf.mxu0 }
 0x177   : > { %981 = vpow2.f32 %v801_v17  ;;  %v802_v20 = vmul.f32 -1.442695, %v491_v18 }
 0x178   : > { %v493_v22 = vpop.f32.mrf.mxu0 }
 0x179   : > { %983 = vpow2.f32 %v802_v20 }
 0x184   : > { %v982_v23 = vpop.eup %981 }
 0x185   : > { %v501_v6 = vadd.f32 1.0, %v982_v23 }
 0x186   : > { %v984_v24 = vpop.eup %983 }
 0x187   : > { %985 = vrcp.f32 %v501_v6  ;;  %v502_v25 = vadd.f32 1.0, %v984_v24 }
 0x189   : > { %987 = vrcp.f32 %v502_v25 }
 0x194   : > { %v986_v26 = vpop.eup %985 }
 0x195   : > { %v1312_v28 = vmul.f32 %v986_v26, %v489_v15 }
 0x196   : > { %v988_v27 = vpop.eup %987 }
 0x197   : > { %v508_v29 = vmul.f32 %v988_v27, %v491_v18 }
 0x199   : > { %v947_v32 = vpack.i.bf16 %v508_v29, %v1312_v28 }
 0x19b   : > { %948 = vrot.lane.b32.xlu0 %v947_v32, %s1014_s25  ;;  %938 = vrot.lane.b32.xlu1 %v947_v32, %s1020_s6 }
 0x19f   : > { %958 = vrot.lane.b32.xlu0 %v947_v32, %s1017_s28  ;;  %943 = vrot.lane.b32.xlu1 %v947_v32, %s1013_s24 }
 0x1a3   : > { %968 = vrot.lane.b32.xlu0 %v947_v32, %s1019_s30  ;;  %953 = vrot.lane.b32.xlu1 %v947_v32, %s1015_s26 }
 0x1a7   : > { %589 = vperm.xlu0 %936, %v585_v33   ;;  %963 = vrot.lane.b32.xlu1 %v947_v32, %s1016_s27 }
 0x1ab   : > { %973 = vrot.lane.b32.xlu1 %v947_v32, %s1018_s29 }
 0x1af   : > { %594 = vperm.xlu1 %977, %v586_v34  }
 0x20d   : > { %v949_v35 = vpop.permute.xlu0 %948  ;;  %v939_v36 = vpop.permute.xlu1 %938 }
 0x20e   : > { %v941_v37 = vunpack.i.h.bf16 %v939_v36  ;;  %v940_v39 = vunpack.i.l.bf16 %v939_v36  ;;  %v951_v40 = vunpack.i.h.bf16 %v949_v35  ;;  %v950_v41 = vunpack.i.l.bf16 %v949_v35 }
 0x210   : > { %v572_v42 = vsel %vm407_vm12, %v941_v37, %v940_v39  ;;  %v571_v43 = vsel %vm407_vm12, %v940_v39, %v941_v37  ;;  %v564_v54 = vsel %vm386_vm3, %v951_v40, %v950_v41  ;;  %v563_v63 = vsel %vm386_vm3, %v950_v41, %v951_v40 }
 0x211   : > { %v944_v44 = vpop.permute.xlu1 %943  ;;  %v574_v45 = vsel %vm1286_vm9, %v572_v42, 0.0  ;;  %v573_v46 = vsel %vm1164_vm11, %v571_v43, 0.0  ;;  %v959_v51 = vpop.permute.xlu0 %958  ;;  %vm1438_vm9 = vmmov %vm1437_vm15  ;;  %vm1022_vm12 = vmmov 1   ;;  %vm1441_vm3 = vcmp.lt.s32.totalorder %v1107_v11, 15 }
 0x212   : > { %v946_v48 = vunpack.i.h.bf16 %v944_v44  ;;  %v945_v49 = vunpack.i.l.bf16 %v944_v44  ;;  %v584_v52 = vpack.c.bf16 %v574_v45, %v574_v45  ;;  %v583_v53 = vpack.c.bf16 %v573_v46, %v573_v46  ;;  %vm808_vm2 = vmpackc.low %vm1022_vm12, %vm1134_vm7 }
 0x213   : > { %v961_v3 = vunpack.i.h.bf16 %v959_v51  ;;  %v960_v5 = vunpack.i.l.bf16 %v959_v51  ;;  %vm811_vm13 = vmpackc.low %vm1156_vm10, %vm1022_vm12 }
 0x214   : > { %v556_v55 = vsel %vm1437_vm15, %v946_v48, %v945_v49  ;;  %v555_v56 = vsel %vm1438_vm9, %v945_v49, %v946_v48  ;;  %804 = vmatprep.subr.msk.bf16.mxu1 %vm606_vm14, %v584_v52  ;;  %v608_v59 = vsel %vm606_vm14, %v583_v53, 0  ;;  %vm1440_vm14 = vmmov %vm1439_vm6 }
 0x215   : > { %v806_v57 = vpack.c.bf16 %v564_v54, %v556_v55  ;;  %v954_v58 = vpop.permute.xlu1 %953  ;;  %620 = vmatpush1.bf16.msra.mxu1 %v608_v59  ;;  %v809_v12 = vpack.c.bf16 %v563_v63, %v555_v56  ;;  %v969_v7 = vpop.permute.xlu0 %968  ;;  %v531_v15 = vsel %vm1441_vm3, %v960_v5, %v961_v3  ;;  %vm814_vm15 = vmpackc.low %vm1164_vm11, %vm1022_vm12 }
 0x216   : > { %v956_v60 = vunpack.i.h.bf16 %v954_v58  ;;  %v955_v61 = vunpack.i.l.bf16 %v954_v58  ;;  %v971_v16 = vunpack.i.h.bf16 %v969_v7  ;;  %v970_v17 = vunpack.i.l.bf16 %v969_v7  ;;  %vm817_vm9 = vmpackc.low %vm1117_vm4, %vm1156_vm10 }
 0x217   : > { %807 = vmatprep.subr.msk.bf16.mxu1 %vm805_vm8, %v806_v57  ;;  %vm1442_vm8 = vcmp.lt.s32.totalorder %v1107_v11, 1  ;;  %vm1444_vm11 = vmmov %vm1441_vm3  ;;  %vm1445_vm10 = vcmp.lt.s32.totalorder %v1107_v11, 16 }
 0x218   : > { %v548_v30 = vsel %vm1439_vm6, %v956_v60, %v955_v61  ;;  %v547_v8 = vsel %vm1440_vm14, %v955_v61, %v956_v60  ;;  %v532_v24 = vsel %vm1444_vm11, %v961_v3, %v960_v5  ;;  %vm820_vm6 = vmpackc.low %vm1134_vm7, %vm1232_vm5  ;;  %v515_v47 = vsel %vm260_vm0, %v970_v17, %v971_v16 }
 0x219   : > { %v812_v9 = vpack.c.bf16 %v548_v30, %v508_v29  ;;  %v964_v10 = vpop.permute.xlu1 %963  ;;  %810 = vmatpush1.bf16.msk.msra.mxu1 %vm808_vm2, %v809_v12  ;;  %v815_v18 = vpack.c.bf16 %v547_v8, %v1312_v28  ;;  %vm1443_vm2 = vmmov %vm1442_vm8  ;;  %v516_v31 = vsel %vm260_vm0, %v971_v16, %v970_v17  ;;  %vm1447_vm5 = vcmp.ge.s32.totalorder %v1107_v11, 16 }
 0x21a   : > { %v966_v13 = vunpack.i.h.bf16 %v964_v10  ;;  %v965_v14 = vunpack.i.l.bf16 %v964_v10  ;;  %vm1446_vm14 = vmmov %vm1445_vm10 }
 0x21b   : > { %813 = vmatprep.subr.msk.bf16.mxu1 %vm811_vm13, %v812_v9  ;;  %vm823_vm13 = vmpackc.low %vm1022_vm12, %vm1117_vm4  ;;  %vm602_vm4 = vcmask 588800  }
 0x21c   : > { %v539_v19 = vsel %vm1442_vm8, %v965_v14, %v966_v13  ;;  %v540_v20 = vsel %vm1443_vm2, %v966_v13, %v965_v14  ;;  %vm826_vm7 = vmpackc.low %vm1447_vm5, %vm1278_vm1 }
 0x21d   : > { %v818_v22 = vpack.c.bf16 %v539_v19, %v531_v15  ;;  %v974_v23 = vpop.permute.xlu1 %973  ;;  %816 = vmatpush1.bf16.msk.msra.mxu1 %vm814_vm15, %v815_v18  ;;  %v821_v25 = vpack.c.bf16 %v540_v20, %v532_v24 }
 0x21e   : > { %v976_v6 = vunpack.i.h.bf16 %v974_v23  ;;  %v975_v50 = vunpack.i.l.bf16 %v974_v23 }
 0x21f   : > { %819 = vmatprep.subr.msk.bf16.mxu1 %vm817_vm9, %v818_v22 }
 0x220   : > { %v523_v26 = vsel %vm1445_vm10, %v975_v50, %v976_v6  ;;  %v524_v27 = vsel %vm1446_vm14, %v976_v6, %v975_v50 }
 0x221   : > { %v824_v28 = vpack.c.bf16 %v523_v26, %v515_v47  ;;  %822 = vmatpush1.bf16.msk.msra.mxu1 %vm820_vm6, %v821_v25  ;;  %v827_v38 = vpack.c.bf16 %v524_v27, %v516_v31 }
 0x222   : > { %v590_v29 = vpop.permute.xlu0 %589 }
 0x223   : > { %825 = vmatprep.subr.msk.bf16.mxu1 %vm823_vm13, %v824_v28 }
 0x225   : > { %828 = vmatpush1.bf16.msk.msra.mxu1 %vm826_vm7, %v827_v38 }
 0x228   : > { %829 = vmatmul.mubr.msk.bf16.vlgmr.msra.gmra.mxu1 %vm602_vm4, %v980_v21 }
 0x22a   : > { %v595_v35 = vpop.permute.xlu1 %594 }
 0x2e8   : > { %v647_v32 = vpop.f32.mrf.mxu1 }
 0x2e9   : > { %v648_v33 = vadd.f32 %v647_v32, %v590_v29 }
 0x2ea   : > { %v649_v34 = vpop.f32.mrf.mxu1 }
 0x2eb   : > { %v830_v36 = vmul.f32 -1.442695, %v648_v33  ;;  %v650_v37 = vadd.f32 %v649_v34, %v590_v29 }
 0x2ec   : > { %v651_v39 = vpop.f32.mrf.mxu1 }
 0x2ed   : > { %989 = vpow2.f32 %v830_v36  ;;  %v831_v62 = vmul.f32 -1.442695, %v650_v37  ;;  %v652_v11 = vadd.f32 %v651_v39, %v595_v35 }
 0x2ee   : > { %v653_v40 = vpop.f32.mrf.mxu1 }
 0x2ef   : > { %991 = vpow2.f32 %v831_v62  ;;  %v832_v41 = vmul.f32 -1.442695, %v652_v11  ;;  %v654_v42 = vadd.f32 %v653_v40, %v595_v35 }
 0x2f1   : > { %993 = vpow2.f32 %v832_v41  ;;  %v833_v43 = vmul.f32 -1.442695, %v654_v42 }
 0x2f3   : > { %995 = vpow2.f32 %v833_v43 }
 0x2fa   : > { %v990_v44 = vpop.eup %989 }
 0x2fb   : > { %v668_v45 = vadd.f32 1.0, %v990_v44 }
 0x2fc   : > { %v992_v46 = vpop.eup %991 }
 0x2fd   : > { %997 = vrcp.f32 %v668_v45  ;;  %v669_v48 = vadd.f32 1.0, %v992_v46 }
 0x2fe   : > { %v994_v49 = vpop.eup %993 }
 0x2ff   : > { %999 = vrcp.f32 %v669_v48  ;;  %v670_v51 = vadd.f32 1.0, %v994_v49 }
 0x300   : > { %v996_v52 = vpop.eup %995 }
 0x301   : > { %1001 = vrcp.f32 %v670_v51  ;;  %v671_v53 = vadd.f32 1.0, %v996_v52 }
 0x303   : > { %1003 = vrcp.f32 %v671_v53 }
 0x30a   : > { %v998_v54 = vpop.eup %997 }
 0x30b   : > { %v680_v55 = vmul.f32 %v998_v54, %v648_v33 }
 0x30c   : > { %v1000_v56 = vpop.eup %999 }
 0x30d   : > { %v684_v57 = vadd.f32 %v680_v55, %v1069_v0  ;;  %v681_v58 = vmul.f32 %v1000_v56, %v650_v37 }
 0x30e   : > { %v1002_v59 = vpop.eup %1001 }
 0x30f   : > { %688 = vst [vmem:[%s224_s22] sm:$0xff] %v684_v57  ;;  %v685_v60 = vadd.f32 %v681_v58, %v1073_v2  ;;  %v682_v61 = vmul.f32 %v1002_v59, %v652_v11 }
 0x310   : > { %v1004_v63 = vpop.eup %1003 }
 0x311   : > { %689 = vst [vmem:[%s224_s22 + $0x8] sm:$0xff] %v685_v60  ;;  %v686_v3 = vadd.f32 %v682_v61, %v1071_v1  ;;  %v683_v5 = vmul.f32 %v1004_v63, %v654_v42 }
 0x313   : > { %690 = vst [vmem:[%s224_s22 + $0x10] sm:$0xff] %v686_v3  ;;  %v687_v12 = vadd.f32 %v683_v5, %v1077_v4 }
 0x315   : > { %691 = vst [vmem:[%s224_s22 + $0x18] sm:$0xff] %v687_v12 }
 0x316 PF: > { %s15_s18 = sadd.s32 1, %s1011_s18  }
 0x317   : > { %p12_p4 = scmp.ge.s32.totalorder %s15_s18, 4  }
 0x319   :  { %14 = sbr.rel (!%p12_p4) target bundleno = 1 (0x1), region = 70 }

</bundles_post_ra>
